<compile_context>
chip_gen: v7x
topology: tpu7x:2x2x1
jax: 0.10.0
libtpu: 0.0.40
codegen_flags: <defaults>
</compile_context>

<pallas_src>
import functools

import jax
import jax.numpy as jnp
from jax.experimental import pallas as pl
from jax.experimental.pallas import tpu as pltpu


def _vmem_limit_bytes():
    """Generation-aware scoped VMEM limit (48 MiB on v7x, 64 MiB elsewhere)."""
    try:
        cap = int(pltpu.get_tpu_info().vmem_capacity_bytes)
    except Exception:
        cap = 64 * 1024 * 1024
    return min((cap * 3) // 4, 64 * 1024 * 1024)


def _choose_tile_b(batch, feat_dim, itemsize, sublane, vmem_limit):
    """Pick a batch-tile size from a VMEM byte budget (lane-padding aware)."""
    lanes = ((max(feat_dim, 1) + 127) // 128) * 128
    # VMEM bytes per row: x tile in native dtype (lane-padded) + labels tile
    # (int32, last dim padded to 128 lanes).
    bytes_per_row = lanes * itemsize + 128 * 4
    # Keep the two double-buffered x/label tiles at <= ~50% of the limit.
    tile = vmem_limit // (4 * bytes_per_row)
    tile = max(sublane, min(tile, 8192))
    tile -= tile % sublane
    if batch <= tile:
        return batch  # single full block (always a legal BlockSpec)
    return tile


def _ocsoftmax_kernel(x_ref, w_ref, lab_ref, out_ref, acc_ref, *,
                      alpha, r_real, r_fake, n_rows, tile_b, steps_per_core):
    c = pl.program_id(0)   # parallel partial-sum axis (TensorCores on v7x)
    i = pl.program_id(1)   # sequential batch-tile axis

    @pl.when(i == 0)
    def _():
        acc_ref[...] = jnp.zeros_like(acc_ref)

    eps = 1e-12  # matches F.normalize default eps

    x = x_ref[...].astype(jnp.float32)   # (tile_b, D), cast after the load
    w = w_ref[...]                       # (1, D) f32, already L2-normalized
    lab = lab_ref[...]                   # (tile_b, 1) int32

    # Fold L2 normalization into the dot:
    #   score = <x, w_hat> / max(||x||, eps)
    #         = sum(x*w_hat) * rsqrt(max(sum(x*x), eps^2))
    sumsq = jnp.sum(x * x, axis=-1, keepdims=True)    # (tile_b, 1)
    dotw = jnp.sum(x * w, axis=-1, keepdims=True)     # (tile_b, 1)
    scores = dotw * jax.lax.rsqrt(jnp.maximum(sumsq, eps * eps))

    # Label-conditional margin (labels outside {0,1} pass through unchanged,
    # matching the PyTorch masked-assignment semantics).
    adj = jnp.where(lab == 0, r_real - scores,
                    jnp.where(lab == 1, scores - r_fake, scores))
    sp = jax.nn.softplus(alpha * adj)                 # (tile_b, 1)

    # Mask rows past the true batch: covers the partial last tile AND the
    # clamped/duplicated block on the overshooting core. Select (not multiply)
    # so undefined padded data (NaN/Inf) cannot leak in.
    blk = c * steps_per_core + i
    row = blk * tile_b + jax.lax.broadcasted_iota(jnp.int32, sp.shape, 0)
    sp = jnp.where(row < n_rows, sp, 0.0)

    acc_ref[...] += jnp.sum(sp, keepdims=True)

    @pl.when(i == pl.num_programs(1) - 1)
    def _():
        # Lane-dense (1, 128) partial-sum block; wrapper reads lane 0.
        out_ref[...] = jnp.broadcast_to(acc_ref[...], out_ref.shape)


def ocsoftmax_loss(x, labels, center, *, r_real=0.9, r_fake=0.5, alpha=20.0,
                   tile_b=None):
    """Pallas implementation of OCSoftmax.forward with reduce=True.

    x:      (B, feat_dim) float (streamed in its native dtype)
    labels: (B,) int (0 = real, 1 = fake)
    center: (1, feat_dim) float parameter
    returns scalar float32 loss
    """
    B, D = x.shape
    eps = 1e-12

    itemsize = int(jnp.dtype(x.dtype).itemsize)
    sublane = max(8, 32 // max(itemsize, 1))  # 8 for f32, 16 for bf16
    vmem_limit = _vmem_limit_bytes()

    # Hoisted out of the grid loop: normalize the tiny (1, D) center once.
    center = center.astype(jnp.float32)
    wn = center / jnp.maximum(
        jnp.linalg.norm(center, axis=1, keepdims=True), eps)

    lab2d = labels.astype(jnp.int32).reshape(B, 1)

    if tile_b is None:
        tile_b = _choose_tile_b(B, D, itemsize, sublane, vmem_limit)
    else:
        tile_b = int(tile_b)
        if tile_b >= B:
            tile_b = B
        else:
            # Never round below the sublane multiple (keeps BlockSpec legal).
            tile_b = max(sublane, ((tile_b + sublane - 1) // sublane) * sublane)
            tile_b = min(tile_b, B)

    nblocks = pl.cdiv(B, tile_b)
    ncores = 2 if nblocks >= 2 else 1
    steps = pl.cdiv(nblocks, ncores)

    def data_map(c, i):
        # Clamp so the DMA never reads past the array; the overshooting
        # core's duplicate block is zeroed by the in-kernel row mask.
        return (jnp.minimum(c * steps + i, nblocks - 1), 0)

    kernel = functools.partial(
        _ocsoftmax_kernel, alpha=float(alpha), r_real=float(r_real),
        r_fake=float(r_fake), n_rows=B, tile_b=tile_b, steps_per_core=steps)

    out = pl.pallas_call(
        kernel,
        out_shape=jax.ShapeDtypeStruct((1, ncores * 128), jnp.float32),
        grid=(ncores, steps),
        in_specs=[
            pl.BlockSpec((tile_b, D), data_map),          # x tile (native dtype)
            pl.BlockSpec((1, D), lambda c, i: (0, 0)),    # normalized center
            pl.BlockSpec((tile_b, 1), data_map),          # labels (int32)
        ],
        out_specs=pl.BlockSpec((1, 128), lambda c, i: (0, c)),
        scratch_shapes=[pltpu.VMEM((1, 1), jnp.float32)],
        compiler_params=pltpu.CompilerParams(
            dimension_semantics=("parallel", "arbitrary"),
            vmem_limit_bytes=vmem_limit),
        cost_estimate=pl.CostEstimate(
            flops=4 * B * D,
            transcendentals=2 * B,
            bytes_accessed=B * D * itemsize + B * 4 + D * 4 + ncores * 512),
    )(x, wn, lab2d)

    partials = out.reshape(ncores, 128)[:, 0]   # one partial sum per core
    return jnp.sum(partials) / B


def _reference_loss(x, labels, center, r_real=0.9, r_fake=0.5, alpha=20.0):
    eps = 1e-12
    x = x.astype(jnp.float32)
    center = center.astype(jnp.float32)
    w = center / jnp.maximum(
        jnp.linalg.norm(center, axis=1, keepdims=True), eps)
    xn = x / jnp.maximum(jnp.linalg.norm(x, axis=1, keepdims=True), eps)
    scores = xn @ w.T                      # (B, 1)
    lab = labels.astype(jnp.float32)[:, None]
    scores = jnp.where(lab == 0.0, r_real - scores, scores)
    scores = jnp.where(lab == 1.0, scores - r_fake, scores)
    return jnp.mean(jax.nn.softplus(alpha * scores))


if __name__ == "__main__":
    feat_dim = 2
    batch = 16

    key = jax.random.PRNGKey(0)
    k_x, k_lab, k_c = jax.random.split(key, 3)

    x = jax.random.normal(k_x, (batch, feat_dim), dtype=jnp.float32)
    labels = jax.random.bernoulli(k_lab, 0.5, (batch,)).astype(jnp.int32)
    # Deterministic stand-in for nn.init.kaiming_uniform_(center, 0.25).
    bound = (6.0 / ((1.0 + 0.25 ** 2) * feat_dim)) ** 0.5
    center = jax.random.uniform(
        k_c, (1, feat_dim), minval=-bound, maxval=bound, dtype=jnp.float32)

    loss = jax.block_until_ready(ocsoftmax_loss(x, labels, center))
    ref = _reference_loss(x, labels, center)
    assert jnp.allclose(loss, ref, rtol=1e-5, atol=1e-5), (loss, ref)

    # Multi-tile path + partial-last-tile masking + 2-way partial sums with a
    # forced small tile (batch=20, tile_b=8 -> 3 blocks, grid=(2,2), the last
    # logical block is half empty and core 1 overshoots by one clamped block).
    batch2 = 20
    x2 = jax.random.normal(jax.random.PRNGKey(1), (batch2, feat_dim),
                           dtype=jnp.float32)
    labels2 = jax.random.bernoulli(
        jax.random.PRNGKey(2), 0.5, (batch2,)).astype(jnp.int32)
    loss2 = jax.block_until_ready(
        ocsoftmax_loss(x2, labels2, center, tile_b=8))
    ref2 = _reference_loss(x2, labels2, center)
    assert jnp.allclose(loss2, ref2, rtol=1e-5, atol=1e-5), (loss2, ref2)

    # Native-dtype streaming path: bf16 activations stay bf16 over HBM and are
    # cast to f32 inside the kernel.
    x3 = x2.astype(jnp.bfloat16)
    loss3 = jax.block_until_ready(ocsoftmax_loss(x3, labels2, center))
    ref3 = _reference_loss(x3.astype(jnp.float32), labels2, center)
    assert jnp.allclose(loss3, ref3, rtol=1e-5, atol=1e-5), (loss3, ref3)

    print("KERNEL_OK")
</pallas_src>

<mosaic_0001>
module attributes {stable_mosaic.version = 11 : i64} {
  func.func @_ocsoftmax_kernel(%arg0: i32, %arg1: i32, %arg2: memref<16x2xf32, #tpu.memory_space<vmem>>, %arg3: memref<1x2xf32, #tpu.memory_space<vmem>>, %arg4: memref<16x1xi32, #tpu.memory_space<vmem>>, %arg5: memref<1x128xf32, #tpu.memory_space<vmem>>, %arg6: memref<1x1xf32, #tpu.memory_space<vmem>>) attributes {dimension_semantics = [#tpu.dimension_semantics<parallel>, #tpu.dimension_semantics<arbitrary>], iteration_bounds = array<i64: 1, 1>, scalar_prefetch = 0 : i64, scratch_operands = 1 : i64, tpu.core_type = #tpu.core_type<tc>, window_params = [{transform_indices = @transform_0, window_bounds = array<i64: 16, 2>}, {pipeline_mode = #tpu.pipeline_mode<synchronous>, transform_indices = @transform_1, window_bounds = array<i64: 1, 2>}, {transform_indices = @transform_2, window_bounds = array<i64: 16, 1>}, {transform_indices = @transform_3, window_bounds = array<i64: 1, 128>}]} {
    %c0_i32 = arith.constant 0 : i32
    %0 = arith.cmpi eq, %arg1, %c0_i32 : i32
    %1 = arith.extui %0 : i1 to i32
    %c0_i32_0 = arith.constant 0 : i32
    %2 = arith.cmpi ne, %1, %c0_i32_0 : i32
    scf.if %2 {
      %cst_24 = arith.constant 0.000000e+00 : f32
      %64 = vector.broadcast %cst_24 : f32 to vector<1x1xf32>
      %c0_25 = arith.constant 0 : index
      %c0_26 = arith.constant 0 : index
      %65 = vector.load %arg6[%c0_25, %c0_26] : memref<1x1xf32, #tpu.memory_space<vmem>>, vector<1x1xf32>
      tpu.vector_store %arg6[%c0_25, %c0_26], %64 {strides = array<i32>} : memref<1x1xf32, #tpu.memory_space<vmem>>, vector<1x1xf32>,
    } else {
    }
    %c0 = arith.constant 0 : index
    %c0_1 = arith.constant 0 : index
    %3 = vector.load %arg2[%c0, %c0_1] : memref<16x2xf32, #tpu.memory_space<vmem>>, vector<16x2xf32>
    %c0_2 = arith.constant 0 : index
    %c0_3 = arith.constant 0 : index
    %4 = vector.load %arg3[%c0_2, %c0_3] : memref<1x2xf32, #tpu.memory_space<vmem>>, vector<1x2xf32>
    %c0_4 = arith.constant 0 : index
    %c0_5 = arith.constant 0 : index
    %5 = vector.load %arg4[%c0_4, %c0_5] : memref<16x1xi32, #tpu.memory_space<vmem>>, vector<16x1xi32>
    %6 = arith.mulf %3, %3 : vector<16x2xf32>
    %cst = arith.constant dense<0.000000e+00> : vector<16xf32>
    %7 = vector.multi_reduction <add>, %6, %cst [1] : vector<16x2xf32> to vector<16xf32>
    %8 = vector.shape_cast %7 : vector<16xf32> to vector<16x1xf32>
    %9 = vector.broadcast %4 : vector<1x2xf32> to vector<16x2xf32>
    %10 = arith.mulf %3, %9 : vector<16x2xf32>
    %cst_6 = arith.constant dense<0.000000e+00> : vector<16xf32>
    %11 = vector.multi_reduction <add>, %10, %cst_6 [1] : vector<16x2xf32> to vector<16xf32>
    %12 = vector.shape_cast %11 : vector<16xf32> to vector<16x1xf32>
    %cst_7 = arith.constant 1.000000e-24 : f32
    %13 = vector.broadcast %cst_7 : f32 to vector<16x1xf32>
    %14 = arith.maximumf %8, %13 : vector<16x1xf32>
    %15 = math.rsqrt %14 : vector<16x1xf32>
    %16 = arith.mulf %12, %15 : vector<16x1xf32>
    %c0_i32_8 = arith.constant 0 : i32
    %17 = vector.broadcast %c0_i32_8 : i32 to vector<16x1xi32>
    %18 = arith.cmpi eq, %5, %17 : vector<16x1xi32>
    %cst_9 = arith.constant 0.899999976 : f32
    %19 = vector.broadcast %cst_9 : f32 to vector<16x1xf32>
    %20 = arith.subf %19, %16 : vector<16x1xf32>
    %c1_i32 = arith.constant 1 : i32
    %21 = vector.broadcast %c1_i32 : i32 to vector<16x1xi32>
    %22 = arith.cmpi eq, %5, %21 : vector<16x1xi32>
    %cst_10 = arith.constant 5.000000e-01 : f32
    %23 = vector.broadcast %cst_10 : f32 to vector<16x1xf32>
    %24 = arith.subf %16, %23 : vector<16x1xf32>
    %25 = arith.select %22, %24, %16 : vector<16x1xi1>, vector<16x1xf32>
    %26 = arith.select %18, %20, %25 : vector<16x1xi1>, vector<16x1xf32>
    %cst_11 = arith.constant 2.000000e+01 : f32
    %27 = vector.broadcast %cst_11 : f32 to vector<16x1xf32>
    %28 = arith.mulf %27, %26 : vector<16x1xf32>
    %cst_12 = arith.constant 0.000000e+00 : f32
    %29 = vector.broadcast %cst_12 : f32 to vector<16x1xf32>
    %30 = arith.maximumf %28, %29 : vector<16x1xf32>
    %31 = vector.broadcast %cst_12 : f32 to vector<16x1xf32>
    %32 = arith.subf %28, %31 : vector<16x1xf32>
    %33 = arith.cmpf one, %32, %32 : vector<16x1xf32>
    %34 = vector.broadcast %cst_12 : f32 to vector<16x1xf32>
    %35 = arith.addf %28, %34 : vector<16x1xf32>
    %36 = math.absf %32 : vector<16x1xf32>
    %cst_13 = arith.constant 0.000000e+00 : f32
    %37 = vector.broadcast %cst_13 : f32 to vector<16x1xf32>
    %38 = arith.subf %37, %36 : vector<16x1xf32>
    %39 = math.exp %38 : vector<16x1xf32>
    %40 = math.log1p %39 : vector<16x1xf32>
    %41 = arith.addf %30, %40 : vector<16x1xf32>
    %42 = arith.select %33, %35, %41 : vector<16x1xi1>, vector<16x1xf32>
    %c1_i32_14 = arith.constant 1 : i32
    %43 = arith.muli %arg0, %c1_i32_14 : i32
    %44 = arith.addi %43, %arg1 : i32
    %c16_i32 = arith.constant 16 : i32
    %45 = arith.muli %44, %c16_i32 : i32
    %46 = tpu.iota {dimensions = array<i32: 0>} : vector<16x1xi32>
    %47 = vector.broadcast %45 : i32 to vector<16x1xi32>
    %48 = arith.addi %47, %46 : vector<16x1xi32>
    %c16_i32_15 = arith.constant 16 : i32
    %49 = vector.broadcast %c16_i32_15 : i32 to vector<16x1xi32>
    %50 = arith.cmpi slt, %48, %49 : vector<16x1xi32>
    %cst_16 = arith.constant 0.000000e+00 : f32
    %51 = vector.broadcast %cst_16 : f32 to vector<16x1xf32>
    %52 = arith.select %50, %42, %51 : vector<16x1xi1>, vector<16x1xf32>
    %c0_17 = arith.constant 0 : index
    %c0_18 = arith.constant 0 : index
    %53 = vector.load %arg6[%c0_17, %c0_18] : memref<1x1xf32, #tpu.memory_space<vmem>>, vector<1x1xf32>
    %54 = vector.shape_cast %52 : vector<16x1xf32> to vector<1x16x1xf32>
    %cst_19 = arith.constant dense<0.000000e+00> : vector<1xf32>
    %55 = vector.multi_reduction <add>, %54, %cst_19 [1, 2] : vector<1x16x1xf32> to vector<1xf32>
    %56 = vector.shape_cast %55 : vector<1xf32> to vector<1x1x1xf32>
    %57 = vector.extract %56[0, 0, 0] : f32 from vector<1x1x1xf32>
    %58 = vector.broadcast %57 : f32 to vector<1x1xf32>
    %59 = arith.addf %53, %58 : vector<1x1xf32>
    %c0_20 = arith.constant 0 : index
    %c0_21 = arith.constant 0 : index
    %60 = vector.load %arg6[%c0_20, %c0_21] : memref<1x1xf32, #tpu.memory_space<vmem>>, vector<1x1xf32>
    tpu.vector_store %arg6[%c0_20, %c0_21], %59 {strides = array<i32>} : memref<1x1xf32, #tpu.memory_space<vmem>>, vector<1x1xf32>,
    %c0_i32_22 = arith.constant 0 : i32
    %61 = arith.cmpi eq, %arg1, %c0_i32_22 : i32
    %62 = arith.extui %61 : i1 to i32
    %c0_i32_23 = arith.constant 0 : i32
    %63 = arith.cmpi ne, %62, %c0_i32_23 : i32
    scf.if %63 {
      %c0_24 = arith.constant 0 : index
      %c0_25 = arith.constant 0 : index
      %64 = vector.load %arg6[%c0_24, %c0_25] : memref<1x1xf32, #tpu.memory_space<vmem>>, vector<1x1xf32>
      %65 = vector.shape_cast %64 : vector<1x1xf32> to vector<1x1xf32>
      %66 = vector.broadcast %65 : vector<1x1xf32> to vector<1x128xf32>
      %c0_26 = arith.constant 0 : index
      %c0_27 = arith.constant 0 : index
      %67 = vector.load %arg5[%c0_26, %c0_27] : memref<1x128xf32, #tpu.memory_space<vmem>>, vector<1x128xf32>
      tpu.vector_store %arg5[%c0_26, %c0_27], %66 {strides = array<i32>} : memref<1x128xf32, #tpu.memory_space<vmem>>, vector<1x128xf32>,
    } else {
    }
    return
  }
  func.func @transform_0(%arg0: i32, %arg1: i32) -> (i32, i32) {
    %c1_i32 = arith.constant 1 : i32
    %0 = arith.muli %arg0, %c1_i32 : i32
    %1 = arith.addi %0, %arg1 : i32
    %c0_i32 = arith.constant 0 : i32
    %2 = arith.minsi %1, %c0_i32 : i32
    %c0_i32_0 = arith.constant 0 : i32
    %c0_i32_1 = arith.constant 0 : i32
    return %2, %c0_i32_0 : i32, i32
  }
  func.func @transform_1(%arg0: i32, %arg1: i32) -> (i32, i32) {
    %c0_i32 = arith.constant 0 : i32
    %c0_i32_0 = arith.constant 0 : i32
    %c0_i32_1 = arith.constant 0 : i32
    return %c0_i32, %c0_i32_0 : i32, i32
  }
  func.func @transform_2(%arg0: i32, %arg1: i32) -> (i32, i32) {
    %c1_i32 = arith.constant 1 : i32
    %0 = arith.muli %arg0, %c1_i32 : i32
    %1 = arith.addi %0, %arg1 : i32
    %c0_i32 = arith.constant 0 : i32
    %2 = arith.minsi %1, %c0_i32 : i32
    %c0_i32_0 = arith.constant 0 : i32
    %c0_i32_1 = arith.constant 0 : i32
    return %2, %c0_i32_0 : i32, i32
  }
  func.func @transform_3(%arg0: i32, %arg1: i32) -> (i32, i32) {
    %c0_i32 = arith.constant 0 : i32
    %c0_i32_0 = arith.constant 0 : i32
    return %c0_i32, %arg0 : i32, i32
  }
}

</mosaic_0001>

<bundles_post_ra>
// kernel: tpu_custom_call.1
= control target key start
LH: loop header
LB: loop body
LE: loop exit
PB: predicated region body
PF: predicated region fallthrough
CT: control target
= control target key end

     0   :  { %vm92_vm0 = vcmask 15360   ;;  %s337_s0 = inlined_call_operand.vmem [shape: f32[16,2], index: 0, kind: input, shape index: {}]   ;;  %s338_s1 = inlined_call_operand.vmem [shape: f32[1,2], index: 1, kind: input, shape index: {}]   ;;  %s339_s2 = inlined_call_operand.vmem [shape: s32[16,1], index: 2, kind: input, shape index: {}]   ;;  %s340_s3 = inlined_call_operand.hbm [shape: f32[1,128], index: 3, kind: output, shape index: {}]  }
   0x1   :  { %v85_v0 = vld [vmem:[%s337_s0] sm:$0xff]  ;;  %v86_v1 = vld [vmem:[%s337_s0 + $0x8] sm:$0xff] }
   0x2   :  { %v239_v2 = vld [vmem:[%s338_s1] ss:$0 sm:$0xff]  ;;  %v90_v3 = vmul.f32 %v85_v0, %v85_v0  ;;  %v91_v4 = vmul.f32 %v86_v1, %v86_v1 }
   0x3   :  { %v105_v5 = vmul.f32 %v239_v2, %v85_v0  ;;  %v106_v6 = vmul.f32 %v239_v2, %v86_v1 }
   0x4   :  { %8 = vsyncpa [#allocation4], 0  ;;  %v93_v7 = vsel %vm92_vm0, %v90_v3, 0.0  ;;  %v96_v9 = vsel %vm92_vm0, %v91_v4, 0.0  ;;  %v88_v16 = vld [vmem:[%s339_s2] sm:$0xff]  ;;  %v89_v22 = vld [vmem:[%s339_s2 + $0x8] sm:$0xff] }
   0x5   :  { %v107_v8 = vsel %vm92_vm0, %v105_v5, 0.0  ;;  %94 = vadd.xlane.f32.xlu0 %v93_v7  ;;  %v110_v10 = vsel %vm92_vm0, %v106_v6, 0.0  ;;  %vm123_vm1 = vcmp.eq.s32.totalorder %v88_v16, 1  ;;  %vm119_vm2 = vcmp.eq.s32.totalorder %v88_v16, 0  ;;  %s287_s20 = smov [#allocation3]  }
   0x6   :  { %108 = vadd.xlane.f32.xlu1 %v107_v8  ;;  %vm124_vm3 = vcmp.eq.s32.totalorder %v89_v22, 1  ;;  %vm120_vm4 = vcmp.eq.s32.totalorder %v89_v22, 0  ;;  %vm182_vm8 = vcmask 7168   ;;  %vm83_vm10 = vcmask 0   ;;  %s219_s21 = sshll.u32 %s287_s20, 4  ;;  %s220_s21 = int_to_ptr.vmem [resolvable:$true] %s219_s21 }
   0x7   :  { %v285_v2 = vmov 0.0   ;;  %v286_v3 = vmov 0   ;;  %s261_s22 = scalar_lea.vmem %s220_s21, 16  ;;  %s265_s23 = scalar_lea.vmem %s220_s21, 32 }
   0x8   :  { %84 = vst.msk [vmem:[#allocation2] sm:$0x1] %vm83_vm10, %v285_v2  ;;  %247 = vset.pattern.permute.xlu1 %v286_v3  ;;  %248 = vset.pattern.permute.xlu0 %v286_v3  ;;  %p262_p0 = scmp.ne.s32.totalorder %s220_s21, %s261_s22  ;;  %p266_p1 = scmp.lt.s32.totalorder %s220_s21, %s220_s21 }
   0x9   :  { %97 = vadd.xlane.f32.xlu0 %v96_v9  ;;  %p267_p2 = scmp.lt.s32.totalorder %s265_s23, %s261_s22 }
   0xa   :  { %111 = vadd.xlane.f32.xlu1 %v110_v10 }
   0xb   :  { %p268_p3 = por %p267_p2, %p266_p1 }
   0xd   :  { %p269_p4 = pnand %p268_p3, %p262_p0 }
  0x92   :  { %v95_v11 = vpop.xlane.xlu0 %94 }
  0x93   :  { %v113_v12 = vmax.f32 %v95_v11, 1e-24  ;;  %v109_v15 = vpop.xlane.xlu1 %108  ;;  %v181_v11 = vld [vmem:[#allocation2] sm:$0x1] }
  0x95   :  { %249 = vrsqrt.f32 %v113_v12 }
  0x96   :  { %v98_v13 = vpop.xlane.xlu0 %97 }
  0x97   :  { %v114_v14 = vmax.f32 %v98_v13, 1e-24  ;;  %v112_v19 = vpop.xlane.xlu1 %111 }
  0x99   :  { %251 = vrsqrt.f32 %v114_v14 }
  0x9f   :  { %v250_v17 = vpop.eup %249 }
  0xa0   :  { %v117_v18 = vmul.f32 %v250_v17, %v109_v15  ;;  %v208_v15 = vlaneseq }
  0xa2   :  { %v121_v20 = vsub.f32 0.9, %v117_v18  ;;  %v240_v21 = vadd.f32 -0.5, %v117_v18  ;;  %v209_v16 = vshrl.u32 %v208_v15, 7 }
  0xa3   :  { %v252_v23 = vpop.eup %251 }
  0xa4   :  { %v127_v24 = vsel %vm123_vm1, %v240_v21, %v117_v18  ;;  %v118_v25 = vmul.f32 %v252_v23, %v112_v19  ;;  %v210_v17 = vsub.s32 0, %v209_v16 }
  0xa5   :  { %v129_v26 = vsel %vm119_vm2, %v121_v20, %v127_v24 }
  0xa6   :  { %v131_v27 = vmul.f32 20.0, %v129_v26  ;;  %v122_v28 = vsub.f32 0.9, %v118_v25  ;;  %v241_v29 = vadd.f32 -0.5, %v118_v25 }
  0xa8   :  { %v139_v30 = vand.u32 2147483647, %v131_v27  ;;  %v128_v31 = vsel %vm124_vm3, %v241_v29, %v118_v25  ;;  %v133_v51 = vmax.f32 %v131_v27, 0.0  ;;  %vm135_vm7 = vcmp.ne.f32.partialorder %v131_v27, %v131_v27 }
  0xa9   :  { %v130_v32 = vsel %vm120_vm4, %v122_v28, %v128_v31 }
  0xaa   :  { %v141_v33 = vsub.f32 0.0, %v139_v30  ;;  %v132_v34 = vmul.f32 20.0, %v130_v32 }
  0xac   :  { %v143_v35 = vmul.f32 1.442695, %v141_v33  ;;  %v140_v36 = vand.u32 2147483647, %v132_v34  ;;  %v134_v58 = vmax.f32 %v132_v34, 0.0  ;;  %vm136_vm9 = vcmp.ne.f32.partialorder %v132_v34, %v132_v34 }
  0xae   :  { %253 = vpow2.f32 %v143_v35  ;;  %v142_v37 = vsub.f32 0.0, %v140_v36 }
  0xb0   :  { %v145_v38 = vmul.f32 1.442695, %v142_v37 }
  0xb2   :  { %255 = vpow2.f32 %v145_v38 }
  0xb8   :  { %v254_v39 = vpop.eup %253 }
  0xb9   :  { %v147_v40 = vadd.f32 1.0, %v254_v39  ;;  %v150_v43 = vmul.f32 -0.5, %v254_v39  ;;  %v153_v46 = vand.u32 2147483647, %v254_v39 }
  0xbb   :  { %257 = vlog2.f32 %v147_v40  ;;  %v151_v44 = vadd.f32 1.0, %v150_v43  ;;  %vm154_vm5 = vcmp.lt.f32.partialorder %v153_v46, 0.0004427343 }
  0xbc   :  { %v256_v41 = vpop.eup %255 }
  0xbd   :  { %v156_v42 = vadd.f32 1.0, %v256_v41  ;;  %v159_v45 = vmul.f32 -0.5, %v256_v41  ;;  %v152_v49 = vmul.f32 %v254_v39, %v151_v44  ;;  %v162_v52 = vand.u32 2147483647, %v256_v41 }
  0xbf   :  { %259 = vlog2.f32 %v156_v42  ;;  %v160_v50 = vadd.f32 1.0, %v159_v45  ;;  %vm163_vm6 = vcmp.lt.f32.partialorder %v162_v52, 0.0004427343 }
  0xc1   :  { %v161_v57 = vmul.f32 %v256_v41, %v160_v50 }
  0xc5   :  { %v258_v47 = vpop.eup %257 }
  0xc6   :  { %v149_v48 = vmul.f32 0.6931472, %v258_v47 }
  0xc8   :  { %v155_v53 = vsel %vm154_vm5, %v152_v49, %v149_v48 }
  0xc9   :  { %v260_v54 = vpop.eup %259  ;;  %v165_v55 = vadd.f32 %v155_v53, %v133_v51 }
  0xca   :  { %v158_v56 = vmul.f32 0.6931472, %v260_v54 }
  0xcb   :  { %v167_v61 = vsel %vm135_vm7, %v131_v27, %v165_v55 }
  0xcc   :  { %v164_v59 = vsel %vm163_vm6, %v161_v57, %v158_v56  ;;  %v183_v63 = vsel %vm182_vm8, %v167_v61, 0.0 }
  0xcd   :  { %v166_v60 = vadd.f32 %v164_v59, %v134_v58 }
  0xcf   :  { %v168_v62 = vsel %vm136_vm9, %v132_v34, %v166_v60 }
  0xd0   :  { %v184_v0 = vsel %vm182_vm8, %v168_v62, 0.0 }
  0xd1   :  { %v185_v1 = vadd.f32 %v184_v0, %v183_v63 }
  0xd3   :  { %186 = vadd.xlane.f32.xlu0 %v185_v1 }
 0x160   :  { %v187_v4 = vpop.xlane.xlu0 %186 }
 0x161   :  { %v188_v5 = vrot.slane %v187_v4, 4 }
 0x163   :  { %v189_v6 = vadd.f32 %v188_v5, %v187_v4 }
 0x165   :  { %v190_v7 = vrot.slane %v189_v6, 2 }
 0x167   :  { %v191_v8 = vadd.f32 %v190_v7, %v189_v6 }
 0x169   :  { %v192_v9 = vrot.slane %v191_v8, 1 }
 0x16b   :  { %v193_v10 = vadd.f32 %v192_v9, %v191_v8 }
 0x16d   :  { %242 = vpush %v193_v10 }
 0x19e   :  { %s243_s2 = spop %242 }
 0x19f   :  { %v195_v12 = vstv %s243_s2 }
 0x1a0   :  { %v196_v13 = vadd.f32 %v195_v12, %v181_v11 }
 0x1a2   :  { %198 = vst.msk [vmem:[#allocation2] sm:$0x1] %vm83_vm10, %v196_v13 }
 0x1a9   :  { %v202_v14 = vld [vmem:[#allocation2] sm:$0x1] }
 0x1aa   :  { %205 = vperm.xlu1 %247, %v202_v14  }
 0x229   :  { %v206_v18 = vpop.permute.xlu1 %205 }
 0x22a   :  { %v211_v19 = vrot.slane %v206_v18, %v210_v17 }
 0x22c   :  { %212 = vst [vmem:[#allocation3] sm:$0x1] %v211_v19 }
 0x22d   :  { %272 = shalt.err (!%p269_p4)
}
 0x22e   :  { %s273_s26 = scalar_lea.hbm %s340_s3, 16 }
 0x22f   :  { %p274_p5 = scmp.ne.s32.totalorder %s340_s3, %s273_s26  ;;  %p277_p6 = scmp.lt.u32.totalorder %s273_s26, %s340_s3 }
 0x231   :  { %p279_p7 = pnand %p277_p6, %p274_p5 }
 0x233   :  { %282 = shalt.err (!%p279_p7)
}
 0x234   :  { %222 = dma.vmem_to_hbm [thread:$0]  %s220_s21, 16, %s340_s3, [#allocation4]  }
 0x235   :  { %283 = dma.done.wait [#allocation4], 16  }
 0x236   :  { %284 = vsyncadd [#allocation4], 4294967280 }
 0x237   :  { %226 = vsyncpa [#allocation4], 1 }

</bundles_post_ra>
